<compile_context>
chip_gen: v7x
topology: tpu7x:2x2x1
jax: 0.10.0
libtpu: 0.0.40
codegen_flags: <defaults>
</compile_context>

<pallas_src>
import functools

import jax
import jax.numpy as jnp
from jax.experimental import pallas as pl
from jax.experimental.pallas import tpu as pltpu

BN_EPS = 1e-5


def _round_up(x, m):
    return (x + m - 1) // m * m


def _vmem_limit_bytes():
    """~75% of physical VMEM (96 MiB on v5e/v6e, 48 MiB on v7x)."""
    try:
        cap = int(pltpu.get_tpu_info().vmem_capacity_bytes)
    except Exception:
        cap = 64 * 1024 * 1024
    return max(32 * 1024 * 1024, cap * 3 // 4)


def _choose_tile_b(batch, dims, vmem_limit):
    """Batch tile: multiple of 16 (bf16 sublanes), VMEM-bounded, >=2 steps."""
    padded_base = _round_up(batch, 16)        # bound padding waste first
    max_dim = max(dims)
    budget = vmem_limit // 3                  # headroom for weights + dbl-buffer
    per_row = 16 * max_dim                    # bf16 in + f32 out, double-buffered
    cap = max(16, min(1024, (budget // per_row) // 16 * 16))
    tile_b = min(padded_base, cap)
    # v7x megacore: give the "parallel" grid >= 2 steps when the batch allows.
    if padded_base >= 32 and tile_b >= padded_base:
        tile_b = _round_up(padded_base // 2, 16)
    padded_b = _round_up(padded_base, tile_b)
    return tile_b, padded_b


# ---------------------------------------------------------------------------
# Kernels
# ---------------------------------------------------------------------------
def _hidden_layer_kernel(x_ref, w_ref, b_ref, h_ref, stats_ref, *,
                         true_b, tile_b, has_pad):
    """h = relu(x @ W + b); previous layer's BN is already folded into W/b.

    Stores h in bf16 and per-tile f32 [sum(h); sum(h*h)] (stats from the
    pre-cast f32 value so BN statistics are not biased by the bf16 store).
    """
    acc = jnp.dot(x_ref[...], w_ref[...], preferred_element_type=jnp.float32)
    h = jnp.maximum(acc + b_ref[...], 0.0)          # f32
    h_ref[...] = h.astype(h_ref.dtype)              # bf16 activation

    def emit_stats(hv):
        s = jnp.sum(hv, axis=0, keepdims=True)
        sq = jnp.sum(hv * hv, axis=0, keepdims=True)
        stats_ref[...] = jnp.concatenate([s, sq], axis=0)[None]

    if not has_pad:
        emit_stats(h)
    else:
        i = pl.program_id(0)
        last = pl.num_programs(0) - 1

        @pl.when(i != last)
        def _():
            emit_stats(h)

        @pl.when(i == last)  # padded rows live only in the last tile
        def _():
            row = i * tile_b + jax.lax.broadcasted_iota(
                jnp.int32, (tile_b, 1), 0)
            emit_stats(jnp.where(row < true_b, h, 0.0))


def _final_layer_kernel(x_ref, w_ref, b_ref, o_ref):
    acc = jnp.dot(x_ref[...], w_ref[...], preferred_element_type=jnp.float32)
    o_ref[...] = (acc + b_ref[...]).astype(o_ref.dtype)


def _fused_net_kernel(*refs, num_hidden, true_b, padded_b):
    """Whole network in one call (small batches): all layers + BN in VMEM."""
    h = refs[0][...]                                  # bf16 (padded_b, in_dim)
    out_ref = refs[-1]
    need_mask = padded_b > true_b
    if need_mask:
        row = jax.lax.broadcasted_iota(jnp.int32, (padded_b, 1), 0)
        valid = row < true_b
    idx = 1
    inv_n = 1.0 / true_b
    for _ in range(num_hidden):
        w_ref, b_ref, g_ref, bt_ref = (refs[idx], refs[idx + 1],
                                       refs[idx + 2], refs[idx + 3])
        idx += 4
        a = jnp.maximum(
            jnp.dot(h, w_ref[...], preferred_element_type=jnp.float32)
            + b_ref[...], 0.0)                        # f32
        am = jnp.where(valid, a, 0.0) if need_mask else a
        mean = jnp.sum(am, axis=0, keepdims=True) * inv_n
        ex2 = jnp.sum(am * am, axis=0, keepdims=True) * inv_n
        var = jnp.maximum(ex2 - mean * mean, 0.0)     # biased variance
        scale = jax.lax.rsqrt(var + BN_EPS) * g_ref[...]
        shift = bt_ref[...] - mean * scale
        h = (a * scale + shift).astype(jnp.bfloat16)  # next MXU operand
    w_ref, b_ref = refs[idx], refs[idx + 1]
    out_ref[...] = (jnp.dot(h, w_ref[...], preferred_element_type=jnp.float32)
                    + b_ref[...]).astype(out_ref.dtype)


# ---------------------------------------------------------------------------
# pallas_call wrappers
# ---------------------------------------------------------------------------
def _hidden_layer_call(x, w_bf16, b, *, true_b, tile_b, has_pad, vmem_limit):
    padded_b, in_dim = x.shape
    out_dim = w_bf16.shape[1]
    num_tiles = padded_b // tile_b
    kernel = functools.partial(_hidden_layer_kernel, true_b=true_b,
                               tile_b=tile_b, has_pad=has_pad)
    cost = pl.CostEstimate(
        flops=2 * padded_b * in_dim * out_dim,
        transcendentals=0,
        bytes_accessed=(2 * padded_b * (in_dim + out_dim)      # bf16 x, bf16 h
                        + 2 * in_dim * out_dim + 4 * out_dim   # bf16 W, f32 b
                        + 8 * num_tiles * out_dim))            # f32 stats
    return pl.pallas_call(
        kernel,
        out_shape=(
            jax.ShapeDtypeStruct((padded_b, out_dim), jnp.bfloat16),
            jax.ShapeDtypeStruct((num_tiles, 2, out_dim), jnp.float32),
        ),
        grid=(num_tiles,),
        in_specs=[
            pl.BlockSpec((tile_b, in_dim), lambda i: (i, 0)),
            # NOTE: W / b are grid-invariant; pipeline_mode=pl.Buffered(1)
            # would halve their VMEM footprint (only matters for very large
            # hidden_dim on v7x) — left at the default for robustness.
            pl.BlockSpec((in_dim, out_dim), lambda i: (0, 0)),
            pl.BlockSpec((1, out_dim), lambda i: (0, 0)),
        ],
        out_specs=(
            pl.BlockSpec((tile_b, out_dim), lambda i: (i, 0)),
            pl.BlockSpec((1, 2, out_dim), lambda i: (i, 0, 0)),
        ),
        compiler_params=pltpu.CompilerParams(
            dimension_semantics=("parallel",), vmem_limit_bytes=vmem_limit),
        cost_estimate=cost,
    )(x, w_bf16, b)


def _final_layer_call(x, w_bf16, b, *, tile_b, vmem_limit):
    padded_b, in_dim = x.shape
    out_dim = w_bf16.shape[1]
    num_tiles = padded_b // tile_b
    cost = pl.CostEstimate(
        flops=2 * padded_b * in_dim * out_dim,
        transcendentals=0,
        bytes_accessed=(2 * padded_b * in_dim + 4 * padded_b * out_dim
                        + 2 * in_dim * out_dim + 4 * out_dim))
    return pl.pallas_call(
        _final_layer_kernel,
        out_shape=jax.ShapeDtypeStruct((padded_b, out_dim), jnp.float32),
        grid=(num_tiles,),
        in_specs=[
            pl.BlockSpec((tile_b, in_dim), lambda i: (i, 0)),
            pl.BlockSpec((in_dim, out_dim), lambda i: (0, 0)),
            pl.BlockSpec((1, out_dim), lambda i: (0, 0)),
        ],
        out_specs=pl.BlockSpec((tile_b, out_dim), lambda i: (i, 0)),
        compiler_params=pltpu.CompilerParams(
            dimension_semantics=("parallel",), vmem_limit_bytes=vmem_limit),
        cost_estimate=cost,
    )(x, w_bf16, b)


def _fused_forward(x_f32, w0, params, batch, padded_b, set_size, output_dim,
                   vmem_limit):
    num_hidden = len(params) - 1
    if padded_b != batch:
        x_f32 = jnp.pad(x_f32, ((0, padded_b - batch), (0, 0)))
    inputs = [x_f32.astype(jnp.bfloat16)]
    for l, layer in enumerate(params[:-1]):
        w = (w0 if l == 0 else layer["w"]).astype(jnp.bfloat16)
        inputs += [w, layer["b"], layer["gamma"], layer["beta"]]
    last = params[-1]
    inputs += [last["w"].astype(jnp.bfloat16), last["b"]]
    out_dim_total = last["w"].shape[1]

    kernel = functools.partial(_fused_net_kernel, num_hidden=num_hidden,
                               true_b=batch, padded_b=padded_b)
    vspec = pl.BlockSpec(memory_space=pltpu.MemorySpace.VMEM)
    out = pl.pallas_call(
        kernel,
        out_shape=jax.ShapeDtypeStruct((padded_b, out_dim_total), jnp.float32),
        in_specs=[vspec] * len(inputs),
        out_specs=vspec,
        compiler_params=pltpu.CompilerParams(vmem_limit_bytes=vmem_limit),
    )(*inputs)
    return out[:batch].reshape(batch, set_size, output_dim)


# ---------------------------------------------------------------------------
# Parameters / forward / reference
# ---------------------------------------------------------------------------
def init_params(key, embedding_dim, output_dim, set_size, hidden_dim, num_layers):
    """PyTorch-style init; weights stored as (in, out)."""
    dims = [embedding_dim] + [hidden_dim] * num_layers + [set_size * output_dim]
    params = []
    for i in range(len(dims) - 1):
        key, kw, kb = jax.random.split(key, 3)
        fan_in, fan_out = dims[i], dims[i + 1]
        bound = 1.0 / jnp.sqrt(float(fan_in))
        w = jax.random.uniform(kw, (fan_in, fan_out), jnp.float32, -bound, bound)
        b = jax.random.uniform(kb, (1, fan_out), jnp.float32, -bound, bound)
        layer = {"w": w, "b": b}
        if i < len(dims) - 2:
            layer["gamma"] = jnp.ones((1, fan_out), jnp.float32)
            layer["beta"] = jnp.zeros((1, fan_out), jnp.float32)
        params.append(layer)
    return params


@functools.partial(jax.jit, static_argnames=("set_size", "output_dim"))
def deep_set_decoder(embedding, params, *, set_size, output_dim):
    batch, in_dim = embedding.shape
    num_hidden = len(params) - 1

    # Lane-dense first layer: zero-pad embedding_dim to a multiple of 128 and
    # zero-pad the first weight's rows to match (zeros cannot change x @ W).
    pad_in = _round_up(in_dim, 128)
    x = embedding.astype(jnp.float32)
    w0 = params[0]["w"]
    if pad_in != in_dim:
        x = jnp.pad(x, ((0, 0), (0, pad_in - in_dim)))
        w0 = jnp.pad(w0, ((0, pad_in - in_dim), (0, 0)))

    dims = [pad_in] + [p["w"].shape[1] for p in params]
    vmem_limit = _vmem_limit_bytes()

    # ---- small problems: one fused pallas_call (no grid, no HBM round trips)
    padded_small = _round_up(batch, 8)
    weight_bytes = sum(2 * p["w"].shape[0] * p["w"].shape[1] for p in params)
    fused_bytes = 6 * padded_small * max(dims) * 4 + 2 * weight_bytes
    if padded_small <= 128 and fused_bytes <= 8 * 1024 * 1024:
        return _fused_forward(x, w0, params, batch, padded_small,
                              set_size, output_dim, vmem_limit)

    # ---- large problems: batch-tiled layer-by-layer path
    tile_b, padded_b = _choose_tile_b(batch, dims, vmem_limit)
    if padded_b != batch:
        x = jnp.pad(x, ((0, padded_b - batch), (0, 0)))
    x = x.astype(jnp.bfloat16)
    has_pad = padded_b != batch

    w_eff = w0.astype(jnp.bfloat16)
    b_eff = params[0]["b"]
    for l in range(num_hidden):
        h, stats = _hidden_layer_call(x, w_eff, b_eff, true_b=batch,
                                      tile_b=tile_b, has_pad=has_pad,
                                      vmem_limit=vmem_limit)
        # Tiny XLA glue: training-mode BN folded into the NEXT layer's W / b.
        mean = jnp.sum(stats[:, 0, :], axis=0, keepdims=True) / batch
        ex2 = jnp.sum(stats[:, 1, :], axis=0, keepdims=True) / batch
        var = jnp.maximum(ex2 - mean * mean, 0.0)            # biased variance
        layer = params[l]
        scale = jax.lax.rsqrt(var + BN_EPS) * layer["gamma"]  # (1, hidden)
        shift = layer["beta"] - mean * scale
        nxt = params[l + 1]
        w_eff = (scale.reshape(-1, 1) * nxt["w"]).astype(jnp.bfloat16)  # fold f32, cast once
        b_eff = nxt["b"] + shift @ nxt["w"]
        x = h

    out = _final_layer_call(x, w_eff, b_eff, tile_b=tile_b,
                            vmem_limit=vmem_limit)
    return out[:batch].reshape(batch, set_size, output_dim)


def deep_set_decoder_ref(embedding, params, *, set_size, output_dim):
    """Pure-JAX f32 reference mirroring the PyTorch forward (training-mode BN)."""
    h = embedding.astype(jnp.float32)
    n = len(params)
    for i, layer in enumerate(params):
        h = h @ layer["w"] + layer["b"]
        if i < n - 1:
            h = jnp.maximum(h, 0.0)
            mean = jnp.mean(h, axis=0, keepdims=True)
            var = jnp.mean((h - mean) ** 2, axis=0, keepdims=True)
            h = (h - mean) / jnp.sqrt(var + BN_EPS) * layer["gamma"] + layer["beta"]
    return h.reshape(h.shape[0], set_size, output_dim)


if __name__ == "__main__":
    embedding_dim = 32
    output_dim = 16
    set_size = 8
    hidden_dim = 128
    num_layers = 3

    key = jax.random.PRNGKey(0)
    key_params, key_x1, key_x2 = jax.random.split(key, 3)
    params = init_params(key_params, embedding_dim, output_dim, set_size,
                         hidden_dim, num_layers)

    # bf16 activations / matmul operands (f32 accumulation) -> loose tolerance.
    ATOL = RTOL = 8e-2

    # 1) Small batch -> fused single-call path.
    x_small = jax.random.normal(key_x1, (8, embedding_dim), jnp.float32)
    out_small = jax.block_until_ready(
        deep_set_decoder(x_small, params, set_size=set_size,
                         output_dim=output_dim))
    ref_small = deep_set_decoder_ref(x_small, params, set_size=set_size,
                                     output_dim=output_dim)
    assert out_small.shape == (8, set_size, output_dim), out_small.shape
    assert jnp.allclose(out_small, ref_small, atol=ATOL, rtol=RTOL), (
        float(jnp.max(jnp.abs(out_small - ref_small))))

    # 2) Larger batch -> tiled multi-step path (batch grid + BN row masking).
    x_big = jax.random.normal(key_x2, (200, embedding_dim), jnp.float32)
    out_big = jax.block_until_ready(
        deep_set_decoder(x_big, params, set_size=set_size,
                         output_dim=output_dim))
    ref_big = deep_set_decoder_ref(x_big, params, set_size=set_size,
                                   output_dim=output_dim)
    assert out_big.shape == (200, set_size, output_dim), out_big.shape
    assert jnp.allclose(out_big, ref_big, atol=ATOL, rtol=RTOL), (
        float(jnp.max(jnp.abs(out_big - ref_big))))

    print("KERNEL_OK")
</pallas_src>

<mosaic_0001>
module attributes {stable_mosaic.version = 11 : i64} {
  func.func @_fused_net_kernel(%arg0: memref<8x128xbf16, #tpu.memory_space<vmem>>, %arg1: memref<128x128xbf16, #tpu.memory_space<vmem>>, %arg2: memref<1x128xf32, #tpu.memory_space<vmem>>, %arg3: memref<1x128xf32, #tpu.memory_space<vmem>>, %arg4: memref<1x128xf32, #tpu.memory_space<vmem>>, %arg5: memref<128x128xbf16, #tpu.memory_space<vmem>>, %arg6: memref<1x128xf32, #tpu.memory_space<vmem>>, %arg7: memref<1x128xf32, #tpu.memory_space<vmem>>, %arg8: memref<1x128xf32, #tpu.memory_space<vmem>>, %arg9: memref<128x128xbf16, #tpu.memory_space<vmem>>, %arg10: memref<1x128xf32, #tpu.memory_space<vmem>>, %arg11: memref<1x128xf32, #tpu.memory_space<vmem>>, %arg12: memref<1x128xf32, #tpu.memory_space<vmem>>, %arg13: memref<128x128xbf16, #tpu.memory_space<vmem>>, %arg14: memref<1x128xf32, #tpu.memory_space<vmem>>, %arg15: memref<8x128xf32, #tpu.memory_space<vmem>>) attributes {dimension_semantics = [], scalar_prefetch = 0 : i64, scratch_operands = 0 : i64, tpu.core_type = #tpu.core_type<tc>} {
    %c0 = arith.constant 0 : index
    %c0_0 = arith.constant 0 : index
    %0 = vector.load %arg0[%c0, %c0_0] : memref<8x128xbf16, #tpu.memory_space<vmem>>, vector<8x128xbf16>
    %c0_1 = arith.constant 0 : index
    %c0_2 = arith.constant 0 : index
    %1 = vector.load %arg1[%c0_1, %c0_2] : memref<128x128xbf16, #tpu.memory_space<vmem>>, vector<128x128xbf16>
    %cst = arith.constant dense<0.000000e+00> : vector<8x128xf32>
    %2 = tpu.matmul %0, %1, %cst {dimension_numbers = #tpu.dot_dimension_numbers<[1], [0], [0], [1], [0, 0, 1, 1], [], []>} : vector<8x128xbf16>, vector<128x128xbf16>, vector<8x128xf32> -> vector<8x128xf32>
    %c0_3 = arith.constant 0 : index
    %c0_4 = arith.constant 0 : index
    %3 = vector.load %arg2[%c0_3, %c0_4] : memref<1x128xf32, #tpu.memory_space<vmem>>, vector<1x128xf32>
    %4 = vector.broadcast %3 : vector<1x128xf32> to vector<8x128xf32>
    %5 = arith.addf %2, %4 : vector<8x128xf32>
    %cst_5 = arith.constant 0.000000e+00 : f32
    %6 = vector.broadcast %cst_5 : f32 to vector<8x128xf32>
    %7 = arith.maximumf %5, %6 : vector<8x128xf32>
    %cst_6 = arith.constant dense<0.000000e+00> : vector<128xf32>
    %8 = vector.multi_reduction <add>, %7, %cst_6 [0] : vector<8x128xf32> to vector<128xf32>
    %9 = vector.shape_cast %8 : vector<128xf32> to vector<1x128xf32>
    %cst_7 = arith.constant 1.250000e-01 : f32
    %10 = vector.broadcast %cst_7 : f32 to vector<1x128xf32>
    %11 = arith.mulf %9, %10 : vector<1x128xf32>
    %12 = arith.mulf %7, %7 : vector<8x128xf32>
    %cst_8 = arith.constant dense<0.000000e+00> : vector<128xf32>
    %13 = vector.multi_reduction <add>, %12, %cst_8 [0] : vector<8x128xf32> to vector<128xf32>
    %14 = vector.shape_cast %13 : vector<128xf32> to vector<1x128xf32>
    %cst_9 = arith.constant 1.250000e-01 : f32
    %15 = vector.broadcast %cst_9 : f32 to vector<1x128xf32>
    %16 = arith.mulf %14, %15 : vector<1x128xf32>
    %17 = arith.mulf %11, %11 : vector<1x128xf32>
    %18 = arith.subf %16, %17 : vector<1x128xf32>
    %cst_10 = arith.constant 0.000000e+00 : f32
    %19 = vector.broadcast %cst_10 : f32 to vector<1x128xf32>
    %20 = arith.maximumf %18, %19 : vector<1x128xf32>
    %cst_11 = arith.constant 9.99999974E-6 : f32
    %21 = vector.broadcast %cst_11 : f32 to vector<1x128xf32>
    %22 = arith.addf %20, %21 : vector<1x128xf32>
    %23 = math.rsqrt %22 : vector<1x128xf32>
    %c0_12 = arith.constant 0 : index
    %c0_13 = arith.constant 0 : index
    %24 = vector.load %arg3[%c0_12, %c0_13] : memref<1x128xf32, #tpu.memory_space<vmem>>, vector<1x128xf32>
    %25 = arith.mulf %23, %24 : vector<1x128xf32>
    %c0_14 = arith.constant 0 : index
    %c0_15 = arith.constant 0 : index
    %26 = vector.load %arg4[%c0_14, %c0_15] : memref<1x128xf32, #tpu.memory_space<vmem>>, vector<1x128xf32>
    %27 = arith.mulf %11, %25 : vector<1x128xf32>
    %28 = arith.subf %26, %27 : vector<1x128xf32>
    %29 = vector.broadcast %25 : vector<1x128xf32> to vector<8x128xf32>
    %30 = arith.mulf %7, %29 : vector<8x128xf32>
    %31 = vector.broadcast %28 : vector<1x128xf32> to vector<8x128xf32>
    %32 = arith.addf %30, %31 : vector<8x128xf32>
    %33 = arith.truncf %32 : vector<8x128xf32> to vector<8x128xbf16>
    %c0_16 = arith.constant 0 : index
    %c0_17 = arith.constant 0 : index
    %34 = vector.load %arg5[%c0_16, %c0_17] : memref<128x128xbf16, #tpu.memory_space<vmem>>, vector<128x128xbf16>
    %cst_18 = arith.constant dense<0.000000e+00> : vector<8x128xf32>
    %35 = tpu.matmul %33, %34, %cst_18 {dimension_numbers = #tpu.dot_dimension_numbers<[1], [0], [0], [1], [0, 0, 1, 1], [], []>} : vector<8x128xbf16>, vector<128x128xbf16>, vector<8x128xf32> -> vector<8x128xf32>
    %c0_19 = arith.constant 0 : index
    %c0_20 = arith.constant 0 : index
    %36 = vector.load %arg6[%c0_19, %c0_20] : memref<1x128xf32, #tpu.memory_space<vmem>>, vector<1x128xf32>
    %37 = vector.broadcast %36 : vector<1x128xf32> to vector<8x128xf32>
    %38 = arith.addf %35, %37 : vector<8x128xf32>
    %cst_21 = arith.constant 0.000000e+00 : f32
    %39 = vector.broadcast %cst_21 : f32 to vector<8x128xf32>
    %40 = arith.maximumf %38, %39 : vector<8x128xf32>
    %cst_22 = arith.constant dense<0.000000e+00> : vector<128xf32>
    %41 = vector.multi_reduction <add>, %40, %cst_22 [0] : vector<8x128xf32> to vector<128xf32>
    %42 = vector.shape_cast %41 : vector<128xf32> to vector<1x128xf32>
    %cst_23 = arith.constant 1.250000e-01 : f32
    %43 = vector.broadcast %cst_23 : f32 to vector<1x128xf32>
    %44 = arith.mulf %42, %43 : vector<1x128xf32>
    %45 = arith.mulf %40, %40 : vector<8x128xf32>
    %cst_24 = arith.constant dense<0.000000e+00> : vector<128xf32>
    %46 = vector.multi_reduction <add>, %45, %cst_24 [0] : vector<8x128xf32> to vector<128xf32>
    %47 = vector.shape_cast %46 : vector<128xf32> to vector<1x128xf32>
    %cst_25 = arith.constant 1.250000e-01 : f32
    %48 = vector.broadcast %cst_25 : f32 to vector<1x128xf32>
    %49 = arith.mulf %47, %48 : vector<1x128xf32>
    %50 = arith.mulf %44, %44 : vector<1x128xf32>
    %51 = arith.subf %49, %50 : vector<1x128xf32>
    %cst_26 = arith.constant 0.000000e+00 : f32
    %52 = vector.broadcast %cst_26 : f32 to vector<1x128xf32>
    %53 = arith.maximumf %51, %52 : vector<1x128xf32>
    %cst_27 = arith.constant 9.99999974E-6 : f32
    %54 = vector.broadcast %cst_27 : f32 to vector<1x128xf32>
    %55 = arith.addf %53, %54 : vector<1x128xf32>
    %56 = math.rsqrt %55 : vector<1x128xf32>
    %c0_28 = arith.constant 0 : index
    %c0_29 = arith.constant 0 : index
    %57 = vector.load %arg7[%c0_28, %c0_29] : memref<1x128xf32, #tpu.memory_space<vmem>>, vector<1x128xf32>
    %58 = arith.mulf %56, %57 : vector<1x128xf32>
    %c0_30 = arith.constant 0 : index
    %c0_31 = arith.constant 0 : index
    %59 = vector.load %arg8[%c0_30, %c0_31] : memref<1x128xf32, #tpu.memory_space<vmem>>, vector<1x128xf32>
    %60 = arith.mulf %44, %58 : vector<1x128xf32>
    %61 = arith.subf %59, %60 : vector<1x128xf32>
    %62 = vector.broadcast %58 : vector<1x128xf32> to vector<8x128xf32>
    %63 = arith.mulf %40, %62 : vector<8x128xf32>
    %64 = vector.broadcast %61 : vector<1x128xf32> to vector<8x128xf32>
    %65 = arith.addf %63, %64 : vector<8x128xf32>
    %66 = arith.truncf %65 : vector<8x128xf32> to vector<8x128xbf16>
    %c0_32 = arith.constant 0 : index
    %c0_33 = arith.constant 0 : index
    %67 = vector.load %arg9[%c0_32, %c0_33] : memref<128x128xbf16, #tpu.memory_space<vmem>>, vector<128x128xbf16>
    %cst_34 = arith.constant dense<0.000000e+00> : vector<8x128xf32>
    %68 = tpu.matmul %66, %67, %cst_34 {dimension_numbers = #tpu.dot_dimension_numbers<[1], [0], [0], [1], [0, 0, 1, 1], [], []>} : vector<8x128xbf16>, vector<128x128xbf16>, vector<8x128xf32> -> vector<8x128xf32>
    %c0_35 = arith.constant 0 : index
    %c0_36 = arith.constant 0 : index
    %69 = vector.load %arg10[%c0_35, %c0_36] : memref<1x128xf32, #tpu.memory_space<vmem>>, vector<1x128xf32>
    %70 = vector.broadcast %69 : vector<1x128xf32> to vector<8x128xf32>
    %71 = arith.addf %68, %70 : vector<8x128xf32>
    %cst_37 = arith.constant 0.000000e+00 : f32
    %72 = vector.broadcast %cst_37 : f32 to vector<8x128xf32>
    %73 = arith.maximumf %71, %72 : vector<8x128xf32>
    %cst_38 = arith.constant dense<0.000000e+00> : vector<128xf32>
    %74 = vector.multi_reduction <add>, %73, %cst_38 [0] : vector<8x128xf32> to vector<128xf32>
    %75 = vector.shape_cast %74 : vector<128xf32> to vector<1x128xf32>
    %cst_39 = arith.constant 1.250000e-01 : f32
    %76 = vector.broadcast %cst_39 : f32 to vector<1x128xf32>
    %77 = arith.mulf %75, %76 : vector<1x128xf32>
    %78 = arith.mulf %73, %73 : vector<8x128xf32>
    %cst_40 = arith.constant dense<0.000000e+00> : vector<128xf32>
    %79 = vector.multi_reduction <add>, %78, %cst_40 [0] : vector<8x128xf32> to vector<128xf32>
    %80 = vector.shape_cast %79 : vector<128xf32> to vector<1x128xf32>
    %cst_41 = arith.constant 1.250000e-01 : f32
    %81 = vector.broadcast %cst_41 : f32 to vector<1x128xf32>
    %82 = arith.mulf %80, %81 : vector<1x128xf32>
    %83 = arith.mulf %77, %77 : vector<1x128xf32>
    %84 = arith.subf %82, %83 : vector<1x128xf32>
    %cst_42 = arith.constant 0.000000e+00 : f32
    %85 = vector.broadcast %cst_42 : f32 to vector<1x128xf32>
    %86 = arith.maximumf %84, %85 : vector<1x128xf32>
    %cst_43 = arith.constant 9.99999974E-6 : f32
    %87 = vector.broadcast %cst_43 : f32 to vector<1x128xf32>
    %88 = arith.addf %86, %87 : vector<1x128xf32>
    %89 = math.rsqrt %88 : vector<1x128xf32>
    %c0_44 = arith.constant 0 : index
    %c0_45 = arith.constant 0 : index
    %90 = vector.load %arg11[%c0_44, %c0_45] : memref<1x128xf32, #tpu.memory_space<vmem>>, vector<1x128xf32>
    %91 = arith.mulf %89, %90 : vector<1x128xf32>
    %c0_46 = arith.constant 0 : index
    %c0_47 = arith.constant 0 : index
    %92 = vector.load %arg12[%c0_46, %c0_47] : memref<1x128xf32, #tpu.memory_space<vmem>>, vector<1x128xf32>
    %93 = arith.mulf %77, %91 : vector<1x128xf32>
    %94 = arith.subf %92, %93 : vector<1x128xf32>
    %95 = vector.broadcast %91 : vector<1x128xf32> to vector<8x128xf32>
    %96 = arith.mulf %73, %95 : vector<8x128xf32>
    %97 = vector.broadcast %94 : vector<1x128xf32> to vector<8x128xf32>
    %98 = arith.addf %96, %97 : vector<8x128xf32>
    %99 = arith.truncf %98 : vector<8x128xf32> to vector<8x128xbf16>
    %c0_48 = arith.constant 0 : index
    %c0_49 = arith.constant 0 : index
    %100 = vector.load %arg13[%c0_48, %c0_49] : memref<128x128xbf16, #tpu.memory_space<vmem>>, vector<128x128xbf16>
    %cst_50 = arith.constant dense<0.000000e+00> : vector<8x128xf32>
    %101 = tpu.matmul %99, %100, %cst_50 {dimension_numbers = #tpu.dot_dimension_numbers<[1], [0], [0], [1], [0, 0, 1, 1], [], []>} : vector<8x128xbf16>, vector<128x128xbf16>, vector<8x128xf32> -> vector<8x128xf32>
    %c0_51 = arith.constant 0 : index
    %c0_52 = arith.constant 0 : index
    %102 = vector.load %arg14[%c0_51, %c0_52] : memref<1x128xf32, #tpu.memory_space<vmem>>, vector<1x128xf32>
    %103 = vector.broadcast %102 : vector<1x128xf32> to vector<8x128xf32>
    %104 = arith.addf %101, %103 : vector<8x128xf32>
    %c0_53 = arith.constant 0 : index
    %c0_54 = arith.constant 0 : index
    %105 = vector.load %arg15[%c0_53, %c0_54] : memref<8x128xf32, #tpu.memory_space<vmem>>, vector<8x128xf32>
    tpu.vector_store %arg15[%c0_53, %c0_54], %104 {strides = array<i32>} : memref<8x128xf32, #tpu.memory_space<vmem>>, vector<8x128xf32>,
    return
  }
}

</mosaic_0001>

<bundles_post_ra>
// kernel: deep_set_decoder.1
= control target key start
LH: loop header
LB: loop body
LE: loop exit
PB: predicated region body
PF: predicated region fallthrough
CT: control target
= control target key end

     0   :  { %v810_v0 = vmov 0.0   ;;  %vm811_vm0 = vmmov 0   ;;  %v189_v44 = vlaneseq  ;;  %s1072_s1 = inlined_call_operand.vmem [shape: bf16[128,128], index: 1, kind: input, shape index: {}]   ;;  %s1073_s0 = inlined_call_operand.vmem [shape: bf16[8,128], index: 0, kind: input, shape index: {}]   ;;  %s1074_s5 = inlined_call_operand.vmem [shape: bf16[128,128], index: 5, kind: input, shape index: {}]   ;;  %s1075_s2 = inlined_call_operand.vmem [shape: f32[1,128], index: 2, kind: input, shape index: {}]   ;;  %s1076_s3 = inlined_call_operand.vmem [shape: f32[1,128], index: 3, kind: input, shape index: {}]   ;;  %s1077_s4 = inlined_call_operand.vmem [shape: f32[1,128], index: 4, kind: input, shape index: {}]   ;;  %s1078_s9 = inlined_call_operand.vmem [shape: bf16[128,128], index: 9, kind: input, shape index: {}]   ;;  %s1079_s6 = inlined_call_operand.vmem [shape: f32[1,128], index: 6, kind: input, shape index: {}]   ;;  %s1080_s7 = inlined_call_operand.vmem [shape: f32[1,128], index: 7, kind: input, shape index: {}]   ;;  %s1081_s8 = inlined_call_operand.vmem [shape: f32[1,128], index: 8, kind: input, shape index: {}]   ;;  %s1082_s13 = inlined_call_operand.vmem [shape: bf16[128,128], index: 13, kind: input, shape index: {}]   ;;  %s1083_s10 = inlined_call_operand.vmem [shape: f32[1,128], index: 10, kind: input, shape index: {}]   ;;  %s1084_s11 = inlined_call_operand.vmem [shape: f32[1,128], index: 11, kind: input, shape index: {}]   ;;  %s1085_s12 = inlined_call_operand.vmem [shape: f32[1,128], index: 12, kind: input, shape index: {}]   ;;  %s1086_s14 = inlined_call_operand.vmem [shape: f32[1,128], index: 14, kind: input, shape index: {}]   ;;  %s1087_s15 = inlined_call_operand.vmem [shape: f32[8,128], index: 15, kind: output, shape index: {}]  }
   0x1   :  { %690 = vmatprep.subr.bf16.mxu0 %v810_v0  ;;  %v772_v1 = vld [vmem:[%s1072_s1] sm:$0xff]   ;;  %706 = vmatprep.mubr.msk.bf16.mxu0 %vm811_vm0, %v810_v0  ;;  %v773_v2 = vld [vmem:[%s1072_s1 + $0x8] sm:$0xff]   ;;  %v774_v3 = vld [vmem:[%s1072_s1 + $0x10] sm:$0xff]  }
   0x2   :  { %710 = vmatprep.subr.bf16.mxu1 %v810_v0  ;;  %726 = vmatprep.mubr.msk.bf16.mxu1 %vm811_vm0, %v810_v0  ;;  %v775_v4 = vld [vmem:[%s1072_s1 + $0x18] sm:$0xff]   ;;  %v776_v5 = vld [vmem:[%s1072_s1 + $0x20] sm:$0xff]   ;;  %v777_v6 = vld [vmem:[%s1072_s1 + $0x28] sm:$0xff]   ;;  %v190_v45 = vshrl.u32 %v189_v44, 7 }
   0x3   :  { %691 = vmatpush3.bf16.msra.mxu0 %v772_v1  ;;  %v778_v7 = vld [vmem:[%s1072_s1 + $0x30] sm:$0xff]   ;;  %v779_v8 = vld [vmem:[%s1072_s1 + $0x38] sm:$0xff]   ;;  %v51_v9 = vld [vmem:[%s1073_s0] sm:$0xf] }
   0x4   :  { %692 = vmatprep.subr.bf16.mxu0 %v810_v0  ;;  %v780_v10 = vld [vmem:[%s1074_s5] sm:$0xff]   ;;  %v781_v11 = vld [vmem:[%s1074_s5 + $0x8] sm:$0xff]   ;;  %v782_v12 = vld [vmem:[%s1074_s5 + $0x10] sm:$0xff]   ;;  %v973_v47 = vsub.s32 0, %v190_v45 }
   0x5   :  { %711 = vmatpush3.bf16.msra.mxu1 %v780_v10  ;;  %v783_v13 = vld [vmem:[%s1074_s5 + $0x18] sm:$0xff]   ;;  %v784_v14 = vld [vmem:[%s1074_s5 + $0x20] sm:$0xff]   ;;  %v785_v15 = vld [vmem:[%s1074_s5 + $0x28] sm:$0xff]  }
   0x6   :  { %712 = vmatprep.subr.bf16.mxu1 %v810_v0  ;;  %v786_v16 = vld [vmem:[%s1074_s5 + $0x30] sm:$0xff]   ;;  %v787_v17 = vld [vmem:[%s1074_s5 + $0x38] sm:$0xff]   ;;  %v618_v18 = vld [vmem:[%s1075_s2] ss:$0 sm:$0xff] }
   0x7   :  { %693 = vmatpush3.bf16.msra.mxu0 %v773_v2  ;;  %v184_v46 = vld [vmem:[%s1076_s3] sm:$0x1]  ;;  %v789_v59 = vld [vmem:[%s1078_s9 + $0x8] sm:$0xff]   ;;  %v790_v60 = vld [vmem:[%s1078_s9 + $0x10] sm:$0xff]  }
   0x8   :  { %694 = vmatprep.subr.bf16.mxu0 %v810_v0  ;;  %v186_v50 = vld [vmem:[%s1077_s4] sm:$0x1]  ;;  %v791_v61 = vld [vmem:[%s1078_s9 + $0x18] sm:$0xff]   ;;  %v793_v63 = vld [vmem:[%s1078_s9 + $0x28] sm:$0xff]  }
   0x9   :  { %713 = vmatpush3.bf16.msra.mxu1 %v781_v11  ;;  %v788_v58 = vld [vmem:[%s1078_s9] sm:$0xff]   ;;  %v794_v1 = vld [vmem:[%s1078_s9 + $0x30] sm:$0xff]   ;;  %v795_v2 = vld [vmem:[%s1078_s9 + $0x38] sm:$0xff]  }
   0xa   :  { %714 = vmatprep.subr.bf16.mxu1 %v810_v0  ;;  %v792_v62 = vld [vmem:[%s1078_s9 + $0x20] sm:$0xff]   ;;  %v801_v45 = vld [vmem:[%s1082_s13 + $0x28] sm:$0xff]  }
   0xb   :  { %695 = vmatpush3.bf16.msra.mxu0 %v774_v3  ;;  %v627_v3 = vld [vmem:[%s1079_s6] ss:$0 sm:$0xff] }
   0xc   :  { %696 = vmatprep.subr.bf16.mxu0 %v810_v0  ;;  %v800_v44 = vld [vmem:[%s1082_s13 + $0x20] sm:$0xff]  }
   0xd   :  { %715 = vmatpush3.bf16.msra.mxu1 %v782_v12 }
   0xe   :  { %716 = vmatprep.subr.bf16.mxu1 %v810_v0 }
   0xf   :  { %697 = vmatpush3.bf16.msra.mxu0 %v775_v4 }
  0x10   :  { %698 = vmatprep.subr.bf16.mxu0 %v810_v0 }
  0x11   :  { %717 = vmatpush3.bf16.msra.mxu1 %v783_v13 }
  0x12   :  { %718 = vmatprep.subr.bf16.mxu1 %v810_v0 }
  0x13   :  { %699 = vmatpush3.bf16.msra.mxu0 %v776_v5 }
  0x14   :  { %700 = vmatprep.subr.bf16.mxu0 %v810_v0 }
  0x15   :  { %719 = vmatpush3.bf16.msra.mxu1 %v784_v14 }
  0x16   :  { %720 = vmatprep.subr.bf16.mxu1 %v810_v0 }
  0x17   :  { %701 = vmatpush3.bf16.msra.mxu0 %v777_v6 }
  0x18   :  { %702 = vmatprep.subr.bf16.mxu0 %v810_v0 }
  0x19   :  { %721 = vmatpush3.bf16.msra.mxu1 %v785_v15 }
  0x1a   :  { %722 = vmatprep.subr.bf16.mxu1 %v810_v0 }
  0x1b   :  { %703 = vmatpush3.bf16.msra.mxu0 %v778_v7 }
  0x1c   :  { %704 = vmatprep.subr.bf16.mxu0 %v810_v0 }
  0x1d   :  { %723 = vmatpush3.bf16.msra.mxu1 %v786_v16 }
  0x1e   :  { %724 = vmatprep.subr.bf16.mxu1 %v810_v0 }
  0x1f   :  { %705 = vmatpush3.bf16.msra.mxu0 %v779_v8 }
  0x20   :  { %730 = vmatprep.subr.bf16.mxu0 %v810_v0 }
  0x21   :  { %725 = vmatpush3.bf16.msra.mxu1 %v787_v17 }
  0x22   :  { %707 = vmatmul.mubr.bf16.vlgmr.msra.gmra.mrb[0].mxu0 %v51_v9  ;;  %750 = vmatprep.subr.bf16.mxu1 %v810_v0 }
  0x23   :  { %746 = vmatprep.mubr.msk.bf16.mxu0 %vm811_vm0, %v810_v0  ;;  %731 = vmatpush3.bf16.msra.mxu0 %v788_v58 }
  0x24   :  { %732 = vmatprep.subr.bf16.mxu0 %v810_v0 }
  0x27   :  { %733 = vmatpush3.bf16.msra.mxu0 %v789_v59 }
  0x28   :  { %734 = vmatprep.subr.bf16.mxu0 %v810_v0 }
  0x2b   :  { %735 = vmatpush3.bf16.msra.mxu0 %v790_v60 }
  0x2c   :  { %736 = vmatprep.subr.bf16.mxu0 %v810_v0 }
  0x2f   :  { %737 = vmatpush3.bf16.msra.mxu0 %v791_v61 }
  0x30   :  { %738 = vmatprep.subr.bf16.mxu0 %v810_v0 }
  0x33   :  { %739 = vmatpush3.bf16.msra.mxu0 %v792_v62 }
  0x34   :  { %740 = vmatprep.subr.bf16.mxu0 %v810_v0 }
  0x37   :  { %741 = vmatpush3.bf16.msra.mxu0 %v793_v63 }
  0x38   :  { %742 = vmatprep.subr.bf16.mxu0 %v810_v0 }
  0x3b   :  { %743 = vmatpush3.bf16.msra.mxu0 %v794_v1 }
  0x3c   :  { %744 = vmatprep.subr.bf16.mxu0 %v810_v0 }
  0x3f   :  { %745 = vmatpush3.bf16.msra.mxu0 %v795_v2 }
  0xf5   :  { %v157_v19 = vpop.f32.mrb[0].mxu0 }
  0xf6   :  { %v158_v20 = vadd.f32 %v618_v18, %v157_v19  ;;  %v708_v21 = vpop.f32.mrb[1].mxu0 }
  0xf7   :  { %v160_v22 = vpop.f32.mrb[2].mxu0 }
  0xf8   :  { %v163_v23 = vmax.f32 %v158_v20, 0.0  ;;  %v709_v24 = vpop.f32.mrb[3].mxu0 }
  0xfa   :  { %v164_v25 = vrot.slane %v163_v23, 4  ;;  %v171_v26 = vmul.f32 %v163_v23, %v163_v23 }
  0xfc   :  { %v165_v27 = vadd.f32 %v164_v25, %v163_v23  ;;  %v172_v28 = vrot.slane %v171_v26, 4 }
  0xfe   :  { %v166_v29 = vrot.slane %v165_v27, 2  ;;  %v173_v30 = vadd.f32 %v172_v28, %v171_v26 }
 0x100   :  { %v167_v31 = vadd.f32 %v166_v29, %v165_v27  ;;  %v174_v32 = vrot.slane %v173_v30, 2  ;;  %v334_v29 = vld [vmem:[%s1080_s7] sm:$0x1] }
 0x102   :  { %v168_v33 = vrot.slane %v167_v31, 1  ;;  %v175_v34 = vadd.f32 %v174_v32, %v173_v30  ;;  %v336_v32 = vld [vmem:[%s1081_s8] sm:$0x1] }
 0x104   :  { %v176_v35 = vrot.slane %v175_v34, 1  ;;  %v169_v36 = vadd.f32 %v168_v33, %v167_v31 }
 0x106   :  { %v177_v37 = vadd.f32 %v176_v35, %v175_v34  ;;  %v170_v38 = vmul.f32 0.125, %v169_v36 }
 0x108   :  { %v178_v39 = vmul.f32 0.125, %v177_v37  ;;  %v179_v40 = vmul.f32 %v170_v38, %v170_v38 }
 0x10a   :  { %v180_v41 = vsub.f32 %v178_v39, %v179_v40  ;;  %v796_v40 = vld [vmem:[%s1082_s13] sm:$0xff]  }
 0x10c   :  { %v181_v42 = vmax.f32 %v180_v41, 0.0  ;;  %v797_v41 = vld [vmem:[%s1082_s13 + $0x8] sm:$0xff]  }
 0x10e   :  { %v182_v43 = vadd.f32 1e-05, %v181_v42  ;;  %v798_v42 = vld [vmem:[%s1082_s13 + $0x10] sm:$0xff]  }
 0x110   :  { %804 = vrsqrt.f32 %v182_v43  ;;  %v799_v43 = vld [vmem:[%s1082_s13 + $0x18] sm:$0xff]  }
 0x11a   :  { %v805_v48 = vpop.eup %804 }
 0x11b   :  { %v185_v49 = vmul.f32 %v805_v48, %v184_v46  ;;  %v802_v46 = vld [vmem:[%s1082_s13 + $0x30] sm:$0xff]   ;;  %v803_v48 = vld [vmem:[%s1082_s13 + $0x38] sm:$0xff]  }
 0x11d   :  { %v187_v51 = vmul.f32 %v185_v49, %v170_v38  ;;  %v192_v52 = vrot.slane %v185_v49, %v973_v47  ;;  %v636_v49 = vld [vmem:[%s1083_s10] ss:$0 sm:$0xff] }
 0x11f   :  { %v188_v53 = vsub.f32 %v186_v50, %v187_v51  ;;  %v193_v54 = vmul.f32 %v192_v52, %v163_v23 }
 0x121   :  { %v198_v55 = vrot.slane %v188_v53, %v973_v47 }
 0x123   :  { %v200_v56 = vadd.f32 %v198_v55, %v193_v54 }
 0x125   :  { %v201_v57 = vpack.c.bf16 %v200_v56, %v200_v56 }
 0x127   :  { %727 = vmatmul.mubr.bf16.vlgmr.msra.gmra.mrb[0].mxu1 %v201_v57 }
 0x128   :  { %766 = vmatprep.mubr.msk.bf16.mxu1 %vm811_vm0, %v810_v0  ;;  %751 = vmatpush3.bf16.msra.mxu1 %v796_v40 }
 0x129   :  { %752 = vmatprep.subr.bf16.mxu1 %v810_v0 }
 0x12c   :  { %753 = vmatpush3.bf16.msra.mxu1 %v797_v41 }
 0x12d   :  { %754 = vmatprep.subr.bf16.mxu1 %v810_v0 }
 0x130   :  { %755 = vmatpush3.bf16.msra.mxu1 %v798_v42 }
 0x131   :  { %756 = vmatprep.subr.bf16.mxu1 %v810_v0 }
 0x134   :  { %757 = vmatpush3.bf16.msra.mxu1 %v799_v43 }
 0x135   :  { %758 = vmatprep.subr.bf16.mxu1 %v810_v0 }
 0x138   :  { %759 = vmatpush3.bf16.msra.mxu1 %v800_v44 }
 0x139   :  { %760 = vmatprep.subr.bf16.mxu1 %v810_v0 }
 0x13c   :  { %761 = vmatpush3.bf16.msra.mxu1 %v801_v45 }
 0x13d   :  { %762 = vmatprep.subr.bf16.mxu1 %v810_v0 }
 0x140   :  { %763 = vmatpush3.bf16.msra.mxu1 %v802_v46 }
 0x141   :  { %764 = vmatprep.subr.bf16.mxu1 %v810_v0 }
 0x144   :  { %765 = vmatpush3.bf16.msra.mxu1 %v803_v48 }
 0x1fa   :  { %v307_v4 = vpop.f32.mrb[0].mxu1 }
 0x1fb   :  { %v308_v5 = vadd.f32 %v627_v3, %v307_v4  ;;  %v728_v6 = vpop.f32.mrb[1].mxu1 }
 0x1fc   :  { %v310_v7 = vpop.f32.mrb[2].mxu1 }
 0x1fd   :  { %v313_v8 = vmax.f32 %v308_v5, 0.0  ;;  %v729_v9 = vpop.f32.mrb[3].mxu1 }
 0x1ff   :  { %v314_v10 = vrot.slane %v313_v8, 4  ;;  %v321_v11 = vmul.f32 %v313_v8, %v313_v8 }
 0x201   :  { %v315_v12 = vadd.f32 %v314_v10, %v313_v8  ;;  %v322_v13 = vrot.slane %v321_v11, 4 }
 0x203   :  { %v316_v14 = vrot.slane %v315_v12, 2  ;;  %v323_v15 = vadd.f32 %v322_v13, %v321_v11  ;;  %v484_v11 = vld [vmem:[%s1084_s11] sm:$0x1] }
 0x205   :  { %v317_v16 = vadd.f32 %v316_v14, %v315_v12  ;;  %v324_v17 = vrot.slane %v323_v15, 2  ;;  %v486_v14 = vld [vmem:[%s1085_s12] sm:$0x1] }
 0x207   :  { %v318_v18 = vrot.slane %v317_v16, 1  ;;  %v325_v19 = vadd.f32 %v324_v17, %v323_v15 }
 0x209   :  { %v319_v20 = vadd.f32 %v318_v18, %v317_v16  ;;  %v326_v21 = vrot.slane %v325_v19, 1 }
 0x20b   :  { %v320_v22 = vmul.f32 0.125, %v319_v20  ;;  %v327_v23 = vadd.f32 %v326_v21, %v325_v19 }
 0x20d   :  { %v328_v24 = vmul.f32 0.125, %v327_v23  ;;  %v329_v25 = vmul.f32 %v320_v22, %v320_v22 }
 0x20f   :  { %v330_v26 = vsub.f32 %v328_v24, %v329_v25 }
 0x211   :  { %v331_v27 = vmax.f32 %v330_v26, 0.0 }
 0x213   :  { %v332_v28 = vadd.f32 1e-05, %v331_v27 }
 0x215   :  { %806 = vrsqrt.f32 %v332_v28 }
 0x21f   :  { %v807_v30 = vpop.eup %806 }
 0x220   :  { %v335_v31 = vmul.f32 %v807_v30, %v334_v29 }
 0x222   :  { %v342_v33 = vrot.slane %v335_v31, %v973_v47  ;;  %v337_v34 = vmul.f32 %v335_v31, %v320_v22  ;;  %v645_v22 = vld [vmem:[%s1086_s14] ss:$0 sm:$0xff] }
 0x224   :  { %v338_v35 = vsub.f32 %v336_v32, %v337_v34  ;;  %v343_v36 = vmul.f32 %v342_v33, %v313_v8 }
 0x226   :  { %v348_v37 = vrot.slane %v338_v35, %v973_v47 }
 0x228   :  { %v350_v38 = vadd.f32 %v348_v37, %v343_v36 }
 0x22a   :  { %v351_v39 = vpack.c.bf16 %v350_v38, %v350_v38 }
 0x22c   :  { %747 = vmatmul.mubr.bf16.vlgmr.msra.gmra.mrb[4].mxu0 %v351_v39 }
 0x2ff   :  { %v457_v50 = vpop.f32.mrb[4].mxu0 }
 0x300   :  { %v458_v51 = vadd.f32 %v636_v49, %v457_v50  ;;  %v748_v52 = vpop.f32.mrb[5].mxu0 }
 0x301   :  { %v460_v53 = vpop.f32.mrb[6].mxu0 }
 0x302   :  { %v463_v54 = vmax.f32 %v458_v51, 0.0  ;;  %v749_v55 = vpop.f32.mrb[7].mxu0 }
 0x304   :  { %v464_v56 = vrot.slane %v463_v54, 4  ;;  %v471_v57 = vmul.f32 %v463_v54, %v463_v54 }
 0x306   :  { %v465_v58 = vadd.f32 %v464_v56, %v463_v54  ;;  %v472_v59 = vrot.slane %v471_v57, 4 }
 0x308   :  { %v466_v60 = vrot.slane %v465_v58, 2  ;;  %v473_v61 = vadd.f32 %v472_v59, %v471_v57 }
 0x30a   :  { %v467_v62 = vadd.f32 %v466_v60, %v465_v58  ;;  %v474_v63 = vrot.slane %v473_v61, 2 }
 0x30c   :  { %v468_v0 = vrot.slane %v467_v62, 1  ;;  %v475_v1 = vadd.f32 %v474_v63, %v473_v61 }
 0x30e   :  { %v469_v2 = vadd.f32 %v468_v0, %v467_v62  ;;  %v476_v3 = vrot.slane %v475_v1, 1 }
 0x310   :  { %v470_v4 = vmul.f32 0.125, %v469_v2  ;;  %v477_v5 = vadd.f32 %v476_v3, %v475_v1 }
 0x312   :  { %v478_v6 = vmul.f32 0.125, %v477_v5  ;;  %v479_v7 = vmul.f32 %v470_v4, %v470_v4 }
 0x314   :  { %v480_v8 = vsub.f32 %v478_v6, %v479_v7 }
 0x316   :  { %v481_v9 = vmax.f32 %v480_v8, 0.0 }
 0x318   :  { %v482_v10 = vadd.f32 1e-05, %v481_v9 }
 0x31a   :  { %808 = vrsqrt.f32 %v482_v10 }
 0x324   :  { %v809_v12 = vpop.eup %808 }
 0x325   :  { %v485_v13 = vmul.f32 %v809_v12, %v484_v11 }
 0x327   :  { %v492_v15 = vrot.slane %v485_v13, %v973_v47  ;;  %v487_v16 = vmul.f32 %v485_v13, %v470_v4 }
 0x329   :  { %v488_v17 = vsub.f32 %v486_v14, %v487_v16  ;;  %v493_v18 = vmul.f32 %v492_v15, %v463_v54 }
 0x32b   :  { %v498_v19 = vrot.slane %v488_v17, %v973_v47 }
 0x32d   :  { %v500_v20 = vadd.f32 %v498_v19, %v493_v18 }
 0x32f   :  { %v501_v21 = vpack.c.bf16 %v500_v20, %v500_v20 }
 0x331   :  { %767 = vmatmul.mubr.bf16.vlgmr.msra.gmra.mrb[4].mxu1 %v501_v21 }
 0x404   :  { %v607_v23 = vpop.f32.mrb[4].mxu1 }
 0x405   :  { %v608_v24 = vadd.f32 %v645_v22, %v607_v23  ;;  %v768_v25 = vpop.f32.mrb[5].mxu1 }
 0x406   :  { %v610_v26 = vpop.f32.mrb[6].mxu1 }
 0x407   :  { %613 = vst [vmem:[%s1087_s15] sm:$0xff] %v608_v24  ;;  %v769_v27 = vpop.f32.mrb[7].mxu1 }

</bundles_post_ra>
